<compile_context>
chip_gen: v5e
topology: v5e:2x2
jax: 0.10.0
libtpu: 0.0.40
codegen_flags: <defaults>
</compile_context>

<pallas_src>
import functools

import jax
import jax.numpy as jnp
from jax.experimental import pallas as pl
from jax.experimental.pallas import tpu as pltpu

_LANE = 128
_SUBLANE = 8
_MAX_BATCH_TILE = 512


def _round_up(x, m):
    return (x + m - 1) // m * m


def _linear_kernel(x_ref, w_ref, o_ref):
    # One MXU matmul per grid step: (TB, S_pad) @ (S_pad, A_pad) -> (TB, A_pad),
    # f32 accumulation. Output is already f32, so no cast is needed.
    o_ref[...] = jnp.dot(
        x_ref[...], w_ref[...], preferred_element_type=jnp.float32
    )


@jax.jit
def linear_forward(x, w_t):
    """x: (B, S) f32, w_t: (S, A) f32 -> (B, A) f32 via a lane-dense Pallas matmul."""
    B, S = x.shape
    S2, A = w_t.shape
    assert S == S2

    # Pad to TPU-friendly shapes (zeros do not change the matmul result).
    s_pad = _round_up(S, _LANE)          # lane-aligned contraction dim
    a_pad = _round_up(A, _LANE)          # lane-dense output dim (unmasked vst)
    tb = min(_round_up(B, _SUBLANE), _MAX_BATCH_TILE)
    b_pad = _round_up(B, tb)
    grid = (b_pad // tb,)

    x_p = jnp.pad(x.astype(jnp.float32), ((0, b_pad - B), (0, s_pad - S)))
    w_p = jnp.pad(w_t.astype(jnp.float32), ((0, s_pad - S), (0, a_pad - A)))

    cost = pl.CostEstimate(
        flops=2 * b_pad * s_pad * a_pad,
        transcendentals=0,
        bytes_accessed=4 * (b_pad * s_pad + s_pad * a_pad + b_pad * a_pad),
    )

    out_p = pl.pallas_call(
        _linear_kernel,
        out_shape=jax.ShapeDtypeStruct((b_pad, a_pad), jnp.float32),
        grid=grid,
        in_specs=[
            # Batch-tiled activations.
            pl.BlockSpec((tb, s_pad), lambda i: (i, 0),
                         memory_space=pltpu.MemorySpace.VMEM),
            # Weight stays VMEM-resident across all batch tiles.
            pl.BlockSpec((s_pad, a_pad), lambda i: (0, 0),
                         memory_space=pltpu.MemorySpace.VMEM),
        ],
        out_specs=pl.BlockSpec((tb, a_pad), lambda i: (i, 0),
                               memory_space=pltpu.MemorySpace.VMEM),
        compiler_params=pltpu.CompilerParams(
            dimension_semantics=("parallel",),   # shards batch tiles across v7x's 2 TCs
        ),
        cost_estimate=cost,
    )(x_p, w_p)

    return out_p[:B, :A]


def orthogonal_init(key, rows, cols, dtype=jnp.float32):
    """Orthogonal init matching torch.nn.init.orthogonal_ semantics
    (QR of a random normal matrix, sign-corrected by diag(R))."""
    flat_rows, flat_cols = (rows, cols) if rows >= cols else (cols, rows)
    a = jax.random.normal(key, (flat_rows, flat_cols), dtype=jnp.float32)
    q, r = jnp.linalg.qr(a)
    d = jnp.sign(jnp.diagonal(r))
    d = jnp.where(d == 0, 1.0, d)  # guard the sign(0) edge case
    q = q * d[None, :]
    if rows < cols:
        q = q.T
    return q.astype(dtype)


class LinearModel:
    """JAX/Pallas equivalent of the PyTorch `linear_model` (forward path only)."""

    def __init__(self, state_size, action_size, key):
        # torch weight shape: (action_size, state_size); store transposed for x @ W.T.
        w = orthogonal_init(key, action_size, state_size)   # (A, S)
        self.w_t = jnp.asarray(w.T)                          # (S, A)
        # TODO(synk): beta_n head (Linear(S,1,bias=False)+Sigmoid) only exists when
        # args.n_backprop > 1 and is never used in forward(); omitted here.

    def __call__(self, state):
        state = jnp.asarray(state, dtype=jnp.float32)
        squeeze = False
        if state.ndim == 1:
            state = state[None, :]
            squeeze = True
        out = linear_forward(state, self.w_t)
        return out[0] if squeeze else out


if __name__ == "__main__":
    key = jax.random.PRNGKey(0)
    k_w, k_x = jax.random.split(key)

    state_space = 32   # env.observation_space.shape[0]
    action_space = 8   # env.action_space.n
    batch = 8

    model = LinearModel(state_space, action_space, k_w)
    x = jax.random.normal(k_x, (batch, state_space), dtype=jnp.float32)

    y = model(x)
    jax.block_until_ready(y)

    # Cross-check against plain JAX reference.
    y_ref = x @ model.w_t
    assert y.shape == (batch, action_space)
    assert jnp.allclose(y, y_ref, atol=1e-5, rtol=1e-5)

    # Also exercise the 1-D (single state) path used by choose_action/q_value.
    y1 = model(x[0])
    jax.block_until_ready(y1)
    assert y1.shape == (action_space,)
    assert jnp.allclose(y1, y_ref[0], atol=1e-5, rtol=1e-5)

    print("KERNEL_OK")
</pallas_src>

<mosaic_0001>
module attributes {stable_mosaic.version = 11 : i64} {
  func.func @_linear_kernel(%arg0: i32, %arg1: memref<8x128xf32, #tpu.memory_space<vmem>>, %arg2: memref<128x128xf32, #tpu.memory_space<vmem>>, %arg3: memref<8x128xf32, #tpu.memory_space<vmem>>) attributes {dimension_semantics = [#tpu.dimension_semantics<parallel>], iteration_bounds = array<i64: 1>, scalar_prefetch = 0 : i64, scratch_operands = 0 : i64, tpu.core_type = #tpu.core_type<tc>, window_params = [{transform_indices = @transform_0, window_bounds = array<i64: 8, 128>}, {pipeline_mode = #tpu.pipeline_mode<synchronous>, transform_indices = @transform_1, window_bounds = array<i64: 128, 128>}, {transform_indices = @transform_2, window_bounds = array<i64: 8, 128>}]} {
    %c0 = arith.constant 0 : index
    %c0_0 = arith.constant 0 : index
    %0 = vector.load %arg1[%c0, %c0_0] : memref<8x128xf32, #tpu.memory_space<vmem>>, vector<8x128xf32>
    %c0_1 = arith.constant 0 : index
    %c0_2 = arith.constant 0 : index
    %1 = vector.load %arg2[%c0_1, %c0_2] : memref<128x128xf32, #tpu.memory_space<vmem>>, vector<128x128xf32>
    %cst = arith.constant dense<0.000000e+00> : vector<8x128xf32>
    %2 = tpu.matmul %0, %1, %cst {dimension_numbers = #tpu.dot_dimension_numbers<[1], [0], [0], [1], [0, 0, 1, 1], [], []>} : vector<8x128xf32>, vector<128x128xf32>, vector<8x128xf32> -> vector<8x128xf32>
    %c0_3 = arith.constant 0 : index
    %c0_4 = arith.constant 0 : index
    %3 = vector.load %arg3[%c0_3, %c0_4] : memref<8x128xf32, #tpu.memory_space<vmem>>, vector<8x128xf32>
    tpu.vector_store %arg3[%c0_3, %c0_4], %2 {strides = array<i32>} : memref<8x128xf32, #tpu.memory_space<vmem>>, vector<8x128xf32>,
    return
  }
  func.func @transform_0(%arg0: i32) -> (i32, i32) {
    %c0_i32 = arith.constant 0 : i32
    %c0_i32_0 = arith.constant 0 : i32
    return %arg0, %c0_i32 : i32, i32
  }
  func.func @transform_1(%arg0: i32) -> (i32, i32) {
    %c0_i32 = arith.constant 0 : i32
    %c0_i32_0 = arith.constant 0 : i32
    %c0_i32_1 = arith.constant 0 : i32
    return %c0_i32, %c0_i32_0 : i32, i32
  }
  func.func @transform_2(%arg0: i32) -> (i32, i32) {
    %c0_i32 = arith.constant 0 : i32
    %c0_i32_0 = arith.constant 0 : i32
    return %arg0, %c0_i32 : i32, i32
  }
}

</mosaic_0001>

<bundles_post_ra>
// kernel: linear_forward.1
= control target key start
LH: loop header
LB: loop body
LE: loop exit
PB: predicated region body
PF: predicated region fallthrough
CT: control target
= control target key end

     0   :  { %s163_s0 = inlined_call_operand.vmem [shape: f32[8,128], index: 0, kind: input, shape index: {}]   ;;  %s164_s1 = inlined_call_operand.vmem [shape: f32[128,128], index: 1, kind: input, shape index: {}]   ;;  %s165_s2 = inlined_call_operand.hbm [shape: f32[8,128], index: 2, kind: output, shape index: {}]  }
   0x1   :  { %v28_v0 = vld [vmem:[%s164_s1 + $0x78] sm:$0xff]  ;;  %v27_v1 = vld [vmem:[%s164_s1 + $0x70] sm:$0xff]  ;;  %v26_v2 = vld [vmem:[%s164_s1 + $0x68] sm:$0xff] }
   0x2   :  { %29 = vmatpush.msra.mxu0 %v28_v0  ;;  %v25_v3 = vld [vmem:[%s164_s1 + $0x60] sm:$0xff] }
   0x4   :  { %30 = vmatpush.msra.mxu0 %v27_v1 }
   0x6   :  { %31 = vmatpush.msra.mxu0 %v26_v2 }
   0x7   :  { %7 = vsyncpa [#allocation3], 0  ;;  %v24_v4 = vld [vmem:[%s164_s1 + $0x58] sm:$0xff]  ;;  %v23_v5 = vld [vmem:[%s164_s1 + $0x50] sm:$0xff]  ;;  %s93_s15 = smov [#allocation2]   ;;  %s57_s19 = sshll.u32 %s165_s2, 4  ;;  %s58_s19 = int_to_ptr.hbm [resolvable:$true] %s57_s19 }
   0x8   :  { %32 = vmatpush.msra.mxu0 %v25_v3  ;;  %v22_v6 = vld [vmem:[%s164_s1 + $0x48] sm:$0xff]  ;;  %v21_v7 = vld [vmem:[%s164_s1 + $0x40] sm:$0xff]  ;;  %v20_v8 = vld [vmem:[%s164_s1 + $0x38] sm:$0xff]  ;;  %s55_s16 = sshll.u32 %s93_s15, 4  ;;  %s56_s16 = int_to_ptr.vmem [resolvable:$true] %s55_s16 }
   0x9   :  { %v19_v9 = vld [vmem:[%s164_s1 + $0x30] sm:$0xff]  ;;  %v18_v10 = vld [vmem:[%s164_s1 + $0x28] sm:$0xff]  ;;  %v17_v11 = vld [vmem:[%s164_s1 + $0x20] sm:$0xff] }
   0xa   :  { %33 = vmatpush.msra.mxu0 %v24_v4  ;;  %v16_v12 = vld [vmem:[%s164_s1 + $0x18] sm:$0xff]  ;;  %v15_v13 = vld [vmem:[%s164_s1 + $0x10] sm:$0xff]  ;;  %v14_v14 = vld [vmem:[%s164_s1 + $0x8] sm:$0xff] }
   0xb   :  { %v13_v15 = vld [vmem:[%s164_s1] sm:$0xff] }
   0xc   :  { %34 = vmatpush.msra.mxu0 %v23_v5  ;;  %v12_v16 = vld [vmem:[%s163_s0] sm:$0xff] }
   0xe   :  { %35 = vmatpush.msra.mxu0 %v22_v6 }
  0x10   :  { %36 = vmatpush.msra.mxu0 %v21_v7 }
  0x12   :  { %37 = vmatpush.msra.mxu0 %v20_v8 }
  0x14   :  { %38 = vmatpush.msra.mxu0 %v19_v9 }
  0x16   :  { %39 = vmatpush.msra.mxu0 %v18_v10 }
  0x18   :  { %40 = vmatpush.msra.mxu0 %v17_v11 }
  0x1a   :  { %41 = vmatpush.msra.mxu0 %v16_v12 }
  0x1c   :  { %42 = vmatpush.msra.mxu0 %v15_v13 }
  0x1e   :  { %43 = vmatpush.msra.mxu0 %v14_v14 }
  0x20   :  { %44 = vmatpush.msra.mxu0 %v13_v15 }
  0x21   :  { %45 = vmatmul.f32.vlgmr.msra.gmra.mxu0 %v12_v16 }
  0x9e   :  { %v46_v17 = vpop.f32.mrf.mxu0 }
  0x9f   :  { %49 = vst [vmem:[#allocation2] sm:$0xff] %v46_v17 }
  0xa0   :  { %60 = dma.vmem_to_hbm [thread:$0]  %s56_s16, 128, %s58_s19, [#allocation3]  }
  0xa1   :  { %91 = dma.done.wait [#allocation3], 128  }
  0xa2   :  { %92 = vsyncadd [#allocation3], 4294967168 }
  0xa3   :  { %65 = vsyncpa [#allocation3], 1 }

</bundles_post_ra>
